<compile_context>
chip_gen: v7x
topology: tpu7x:2x2x1
jax: 0.10.0
libtpu: 0.0.40
codegen_flags: <defaults>
</compile_context>

<pallas_src>
import functools

import jax
import jax.numpy as jnp
from jax import lax
from jax.experimental import pallas as pl
from jax.experimental.pallas import tpu as pltpu


def _gating_kernel(x_ref, w_ref, b_ref, o_ref, *scratch, tile_n, mxu_dtype):
    j = pl.program_id(0)                      # feature-block index (outer)
    i = pl.program_id(1)                      # batch-block index (inner/fastest)

    x = x_ref[...]                            # [tile_b, F] (f32 or input dtype)

    if mxu_dtype is None:
        x_mm = x
        w_mm = w_ref[...]                     # [tile_n, F] (PyTorch [out, in])
    else:
        (w_cache,) = scratch                  # VMEM [tile_n, F] in mxu_dtype

        # The weight tile is resident across the whole i (batch) sweep; cast it
        # to the MXU dtype once per j, not once per batch step.
        @pl.when(i == 0)
        def _():
            w_cache[...] = w_ref[...].astype(mxu_dtype)

        x_mm = x.astype(mxu_dtype)            # fresh tile each step -> per-step cast
        w_mm = w_cache[...]

    # x @ W.T on the MXU: contract the last axis of both operands, f32 accumulate.
    logits = lax.dot_general(
        x_mm, w_mm,
        dimension_numbers=(((1,), (1,)), ((), ())),
        preferred_element_type=jnp.float32)
    logits = logits + b_ref[...]              # [tile_b, tile_n] + [1, tile_n]
    gate = jax.nn.sigmoid(logits)             # EUP, f32

    # The gating multiply only needs the j-th feature block of x.  (A second
    # VMEM read of an already-resident tile: the vld slot is not the binding
    # unit in this mem-bound kernel, so this is effectively free.)
    start = pl.multiple_of(j * tile_n, tile_n)
    x_blk = x_ref[:, pl.ds(start, tile_n)]    # [tile_b, tile_n]
    o_ref[...] = (x_blk.astype(jnp.float32) * gate).astype(o_ref.dtype)


def _pick_tile(dim, candidates):
    for c in candidates:
        if dim >= c and dim % c == 0:
            return c
    # Fall back to the full dimension (always a legal block shape).  This
    # collapses the grid axis to 1 (no pipelining along it) for ragged sizes.
    return dim


def _vmem_bytes_needed(tile_b, tile_n, F, x_bytes, w_bytes, o_bytes, cache_bytes):
    return (2 * tile_b * F * x_bytes          # x row blocks   (double-buffered)
            + 2 * tile_n * F * w_bytes        # weight blocks  (double-buffered)
            + 2 * tile_b * tile_n * o_bytes   # output blocks  (double-buffered)
            + 2 * tile_n * 4                  # bias blocks
            + tile_n * F * cache_bytes)       # bf16 weight-cache scratch


def gating_layer(x, weight, bias, *, tile_b=None, tile_n=None, mxu_dtype=None,
                 vmem_budget_bytes=40 << 20):
    """x: [B, F]; weight: [F, F] (PyTorch [out, in]); bias: [F]."""
    B, F = x.shape
    x_bytes = x.dtype.itemsize
    w_bytes = weight.dtype.itemsize
    o_bytes = x.dtype.itemsize
    cache_bytes = jnp.dtype(mxu_dtype).itemsize if mxu_dtype is not None else 0

    # ---- tile selection -----------------------------------------------------
    if tile_b is None:
        if 2 * B * F * x_bytes <= vmem_budget_bytes // 4:
            tile_b = B                        # small-batch fast path: x resident
        elif mxu_dtype is not None:
            # bf16 packs 16 rows / vreg and the MXU is 256 tall: avoid tiny M.
            tile_b = _pick_tile(B, (256, 128, 64, 32, 16))
        else:
            tile_b = _pick_tile(B, (256, 128, 64, 32, 16, 8))
    if tile_n is None:
        cands = [c for c in (1024, 512, 256, 128) if F >= c and F % c == 0]
        if not cands:
            tile_n = F
        else:
            tile_n = cands[-1]
            for c in cands:                   # largest tile_n that fits the budget
                if _vmem_bytes_needed(tile_b, c, F, x_bytes, w_bytes,
                                      o_bytes, cache_bytes) <= vmem_budget_bytes:
                    tile_n = c
                    break

    assert F % tile_n == 0 and (tile_n % 128 == 0 or tile_n == F)
    assert B % tile_b == 0 and (tile_b % 8 == 0 or tile_b == B)

    # Explicit, generation-aware VMEM limit derived from the chosen tiles
    # (defaults are 16 MiB on v5e / 32 MiB on v6e+v7x and would reject the
    # larger tiles; the selection budget keeps us under v7x's 64 MiB physical).
    need = _vmem_bytes_needed(tile_b, tile_n, F, x_bytes, w_bytes,
                              o_bytes, cache_bytes)
    vmem_limit = max(16 << 20, min(int(need * 1.25) + (2 << 20), 100 << 20))

    grid = (F // tile_n, B // tile_b)         # batch axis last (fastest)
    b2 = bias.reshape(1, F)                   # keep 2-D for TPU layout

    kernel = functools.partial(_gating_kernel, tile_n=tile_n, mxu_dtype=mxu_dtype)
    scratch_shapes = (
        [pltpu.VMEM((tile_n, F), mxu_dtype)] if mxu_dtype is not None else [])

    return pl.pallas_call(
        kernel,
        out_shape=jax.ShapeDtypeStruct((B, F), x.dtype),
        grid=grid,
        in_specs=[
            pl.BlockSpec((tile_b, F), lambda j, i: (i, 0)),    # x row block
            pl.BlockSpec((tile_n, F), lambda j, i: (j, 0)),    # W[out, in] rows
            pl.BlockSpec((1, tile_n), lambda j, i: (0, j)),    # bias slice
        ],
        out_specs=pl.BlockSpec((tile_b, tile_n), lambda j, i: (i, j)),
        scratch_shapes=scratch_shapes,
        compiler_params=pltpu.CompilerParams(
            # j "parallel": megacore shards the feature axis so each core reads
            # only its half of the F^2 weight; i "arbitrary": each core walks
            # the batch sweep in order (needed for the once-per-j weight cast).
            dimension_semantics=("parallel", "arbitrary"),
            vmem_limit_bytes=vmem_limit),
    )(x, weight, b2)


if __name__ == "__main__":
    key = jax.random.PRNGKey(0)
    kx, kw, kb = jax.random.split(key, 3)

    batch, input_size = 16, 256
    x = jax.random.normal(kx, (batch, input_size), dtype=jnp.float32)
    # Deterministic init mimicking nn.Linear default (uniform in +-1/sqrt(in)).
    bound = 1.0 / (input_size ** 0.5)
    weight = jax.random.uniform(kw, (input_size, input_size),
                                minval=-bound, maxval=bound, dtype=jnp.float32)
    bias = jax.random.uniform(kb, (input_size,),
                              minval=-bound, maxval=bound, dtype=jnp.float32)

    # Pure-JAX reference (PyTorch semantics: x * sigmoid(x @ W.T + b)).
    ref = x * jax.nn.sigmoid(x @ weight.T + bias)

    # (1) f32 MXU path; explicit small tiles force a (2, 2) grid so the tiled
    #     (weight-resident / pipelined) path is exercised.
    out = gating_layer(x, weight, bias, tile_b=8, tile_n=128)
    jax.block_until_ready(out)
    assert jnp.allclose(out, ref, atol=1e-5, rtol=1e-5), "f32 tiled mismatch"

    # (2) bf16 MXU path: exercises the once-per-j cached weight cast
    #     (pl.when(i == 0) + VMEM scratch).  Looser tolerance for bf16 inputs.
    out_bf16 = gating_layer(x, weight, bias, tile_b=8, tile_n=128,
                            mxu_dtype=jnp.bfloat16)
    jax.block_until_ready(out_bf16)
    assert jnp.allclose(out_bf16, ref, atol=5e-2, rtol=5e-2), "bf16 tiled mismatch"

    # (3) Default tile selection: small-batch fast path (x resident, tile_b=B).
    out_def = gating_layer(x, weight, bias)
    jax.block_until_ready(out_def)
    assert jnp.allclose(out_def, ref, atol=1e-5, rtol=1e-5), "default-path mismatch"

    print("KERNEL_OK")
</pallas_src>

<mosaic_0001>
module attributes {stable_mosaic.version = 11 : i64} {
  func.func @_gating_kernel(%arg0: i32, %arg1: i32, %arg2: memref<8x256xf32, #tpu.memory_space<vmem>>, %arg3: memref<128x256xf32, #tpu.memory_space<vmem>>, %arg4: memref<1x128xf32, #tpu.memory_space<vmem>>, %arg5: memref<8x128xf32, #tpu.memory_space<vmem>>) attributes {dimension_semantics = [#tpu.dimension_semantics<parallel>, #tpu.dimension_semantics<arbitrary>], iteration_bounds = array<i64: 2, 2>, scalar_prefetch = 0 : i64, scratch_operands = 0 : i64, tpu.core_type = #tpu.core_type<tc>, window_params = [{transform_indices = @transform_0, window_bounds = array<i64: 8, 256>}, {transform_indices = @transform_1, window_bounds = array<i64: 128, 256>}, {transform_indices = @transform_2, window_bounds = array<i64: 1, 128>}, {transform_indices = @transform_3, window_bounds = array<i64: 8, 128>}]} {
    %c0 = arith.constant 0 : index
    %c0_0 = arith.constant 0 : index
    %0 = vector.load %arg2[%c0, %c0_0] : memref<8x256xf32, #tpu.memory_space<vmem>>, vector<8x256xf32>
    %c0_1 = arith.constant 0 : index
    %c0_2 = arith.constant 0 : index
    %1 = vector.load %arg3[%c0_1, %c0_2] : memref<128x256xf32, #tpu.memory_space<vmem>>, vector<128x256xf32>
    %cst = arith.constant dense<0.000000e+00> : vector<8x128xf32>
    %2 = tpu.matmul %0, %1, %cst {dimension_numbers = #tpu.dot_dimension_numbers<[1], [1], [0], [0], [0, 0, 1, 0], [], []>} : vector<8x256xf32>, vector<128x256xf32>, vector<8x128xf32> -> vector<8x128xf32>
    %c0_3 = arith.constant 0 : index
    %c0_4 = arith.constant 0 : index
    %3 = vector.load %arg4[%c0_3, %c0_4] : memref<1x128xf32, #tpu.memory_space<vmem>>, vector<1x128xf32>
    %4 = vector.broadcast %3 : vector<1x128xf32> to vector<8x128xf32>
    %5 = arith.addf %2, %4 : vector<8x128xf32>
    %6 = arith.negf %5 : vector<8x128xf32>
    %7 = math.exp %6 : vector<8x128xf32>
    %cst_5 = arith.constant 1.000000e+00 : f32
    %8 = vector.broadcast %cst_5 : f32 to vector<8x128xf32>
    %9 = arith.addf %8, %7 : vector<8x128xf32>
    %10 = arith.divf %8, %9 : vector<8x128xf32>
    %c128_i32 = arith.constant 128 : i32
    %11 = arith.muli %arg0, %c128_i32 : i32
    %12 = tpu.assume_multiple %11, 128 : i32
    %c0_6 = arith.constant 0 : index
    %13 = arith.index_cast %12 : i32 to index
    %14 = vector.load %arg2[%c0_6, %13] : memref<8x256xf32, #tpu.memory_space<vmem>>, vector<8x128xf32>
    %15 = arith.mulf %14, %10 : vector<8x128xf32>
    %c0_7 = arith.constant 0 : index
    %c0_8 = arith.constant 0 : index
    %16 = vector.load %arg5[%c0_7, %c0_8] : memref<8x128xf32, #tpu.memory_space<vmem>>, vector<8x128xf32>
    tpu.vector_store %arg5[%c0_7, %c0_8], %15 {strides = array<i32>} : memref<8x128xf32, #tpu.memory_space<vmem>>, vector<8x128xf32>,
    return
  }
  func.func @transform_0(%arg0: i32, %arg1: i32) -> (i32, i32) {
    %c0_i32 = arith.constant 0 : i32
    %c0_i32_0 = arith.constant 0 : i32
    return %arg1, %c0_i32 : i32, i32
  }
  func.func @transform_1(%arg0: i32, %arg1: i32) -> (i32, i32) {
    %c0_i32 = arith.constant 0 : i32
    %c0_i32_0 = arith.constant 0 : i32
    return %arg0, %c0_i32 : i32, i32
  }
  func.func @transform_2(%arg0: i32, %arg1: i32) -> (i32, i32) {
    %c0_i32 = arith.constant 0 : i32
    %c0_i32_0 = arith.constant 0 : i32
    return %c0_i32, %arg0 : i32, i32
  }
  func.func @transform_3(%arg0: i32, %arg1: i32) -> (i32, i32) {
    %c0_i32 = arith.constant 0 : i32
    return %arg1, %arg0 : i32, i32
  }
}

</mosaic_0001>

<bundles_post_ra>
// kernel: tpu_custom_call.1
= control target key start
LH: loop header
LB: loop body
LE: loop exit
PB: predicated region body
PF: predicated region fallthrough
CT: control target
= control target key end

     0   :  { %s1321_s0 = inlined_call_operand.hbm [shape: f32[16,256], index: 0, kind: input, shape index: {}]   ;;  %s1322_s1 = inlined_call_operand.hbm [shape: f32[256,256], index: 1, kind: input, shape index: {}]   ;;  %s1323_s2 = inlined_call_operand.vmem [shape: f32[1,256], index: 2, kind: input, shape index: {}]   ;;  %s1324_s3 = inlined_call_operand.hbm [shape: f32[16,256], index: 3, kind: output, shape index: {}]  }
   0x1   :  { %1332 = sst [smem:[#allocation18_spill]] %s1321_s0 }
   0x2   :  { %8 = vsyncpa [#allocation3], 0 }
   0x3   :  { %10 = vsyncpa [#allocation3 + $0x1], 0 }
   0x4   :  { %11 = vsyncpa [#allocation6], 0 }
   0x5   :  { %13 = vsyncpa [#allocation6 + $0x1], 0 }
   0x6   :  { %14 = vsyncpa [#allocation4], 0 }
   0x7   :  { %16 = vsyncpa [#allocation4 + $0x1], 0  ;;  %s948_s12 = smov 0   ;;  %s950_s13 = smov 0  }
   0x8   :  { %s952_s14 = smov 0   ;;  %s954_s15 = smov 0  }
   0x9   :  { %s956_s16 = smov 0   ;;  %s958_s17 = smov 0  }
   0xa   :  { %s960_s18 = smov 0   ;;  %s962_s19 = smov 0  }
   0xb   :  { %s964_s20 = smov 0   ;;  %s966_s21 = smov 0  }
   0xc   :  { %s968_s22 = smov 0   ;;  %s970_s23 = smov 0  }
   0xd   :  { %s972_s24 = smov 0   ;;  %s974_s25 = smov 0  }
   0xe LB: > { %1333 = sst [smem:[#allocation11_spill]] %s913_s23  ;;  %s515_s26 = sadd.s32 4294967295, %s921_s25   ;;  %s921_s25 = sphi %s974_s25, %s22_s25   ;;  %s917_s24 = sphi %s972_s24, %s1364_s24   ;;  %s913_s23 = sphi %s970_s23, %s1363_s23   ;;  %s909_s22 = sphi %s968_s22, %s1362_s22   ;;  %s905_s21 = sphi %s966_s21, %s1361_s21   ;;  %s901_s20 = sphi %s964_s20, %s1373_s20   ;;  %s897_s19 = sphi %s962_s19, %s1372_s19   ;;  %s893_s18 = sphi %s960_s18, %s1371_s18   ;;  %s889_s17 = sphi %s958_s17, %s1370_s17   ;;  %s885_s16 = sphi %s956_s16, %s1369_s16   ;;  %s881_s15 = sphi %s954_s15, %s1368_s15   ;;  %s877_s14 = sphi %s952_s14, %s1367_s14   ;;  %s873_s13 = sphi %s950_s13, %s1366_s13   ;;  %s869_s12 = sphi %s948_s12, %s1365_s12  }
   0xf   : > { %1334 = sst [smem:[#allocation12_spill]] %s917_s24  ;;  %s31_s28 = sadd.s32 1, %s913_s23 }
  0x10   : > { %s34_s29 = sadd.s32 1, %s917_s24  ;;  %p32_p0 = scmp.ge.s32.totalorder %s31_s28, 2 }
  0x11   : > { %s41_s30 = sadd.s32 1, %s901_s20  ;;  %p48_p1 = scmp.ne.s32.totalorder %s901_s20, %s897_s19 }
  0x12   : > { %p49_p2 = scmp.eq.s32.totalorder %s921_s25, 0  ;;  %s1375_s28 = smov (%p32_p0, %s31_s28), 0 }
  0x13   : > { %1335 = sst [smem:[#allocation13_spill]] %s1375_s28  ;;  %s1377_s29 = smov (!%p32_p0, %s34_s29), %s917_s24 }
  0x14   : > { %s38_s4 = ssub.s32 %s913_s23, %s1375_s28  ;;  %p1031_p3 = por %p49_p2, %p48_p1 }
  0x15   : > { %p36_p4 = scmp.ge.s32.totalorder %s1377_s29, 2  ;;  %p39_p5 = scmp.eq.s32.totalorder %s38_s4, 0 }
  0x16   : > { %p54_p6 = scmp.ne.s32.totalorder %s897_s19, %s893_s18  ;;  %p55_p7 = scmp.eq.s32.totalorder %s515_s26, 0 }
  0x17   : > { %s1379_s29 = smov (%p36_p4, %s1377_s29), 0  ;;  %s67_s9 = sadd.s32 1, %s889_s17 }
  0x18   : > { %1337 = sst [smem:[#allocation14_spill]] %s1379_s29  ;;  %p1043_p8 = por %p55_p7, %p54_p6 }
  0x19   : > { %s1041_s6 = scalar_select %p39_p5, %s901_s20, %s41_s30  }
  0x1a   : > { %s1339_s7 = scalar_select %p1043_p8, 1, 0 }
  0x1b   : > { %1338 = sst [smem:[#allocation15_spill]] %s1041_s6  ;;  %s64_s8 = ssub.s32 %s917_s24, %s1379_s29 }
  0x1c   : > { %p65_p9 = scmp.eq.s32.totalorder %s64_s8, 0  ;;  %p74_p10 = scmp.ne.s32.totalorder %s889_s17, %s885_s16 }
  0x1d   : > { %p80_p11 = scmp.ne.s32.totalorder %s885_s16, %s881_s15  ;;  %s118_s30 = sor.u32 %s64_s8, %s38_s4 }
  0x1e   : > { %s1055_s10 = scalar_select %p65_p9, %s889_s17, %s67_s9  }
  0x1f   : > { %p1059_p12 = por %p74_p10, %p49_p2  ;;  %p1063_p13 = por %p80_p11, %p55_p7 }
  0x20   : > { %1340 = sst [smem:[#allocation16_spill]] %s1055_s10  ;;  %s121_s27 = sadd.s32 1, %s877_s14 }
  0x21   : > { %s1342_s18 = scalar_select %p1063_p13, 1, 0 }
  0x22   : > { %p119_p0 = scmp.eq.s32.totalorder %s118_s30, 0  ;;  %p131_p1 = scmp.ne.s32.totalorder %s877_s14, %s873_s13 }
  0x23   : > { %p132_p4 = scmp.eq.s32.totalorder %s515_s26, 3  ;;  %p137_p5 = scmp.ne.s32.totalorder %s873_s13, %s869_s12 }
  0x24   : > { %s1075_s15 = scalar_select %p119_p0, %s877_s14, %s121_s27  }
  0x25   : > { %p1077_p2 = por %p132_p4, %p131_p1  ;;  %s1345_s29 = sadd.s32 4294967294, %s921_s25  }
  0x26   : > { %1343 = sst [smem:[#allocation17_spill]] %s1075_s15  ;;  %p138_p6 = scmp.eq.s32.totalorder %s1345_s29, 3 }
  0x27   : > { %s1344_s9 = scalar_select %p1077_p2, 1, 0 }
  0x28   : > { %p591_p7 = scmp.lt.s32.totalorder %s921_s25, 4  ;;  %p1084_p9 = por %p138_p6, %p137_p5 }
  0x29   : > { %s158_s8 = sand.u32 1, %s901_s20   ;;  %s539_s28 = sshll.u32 %s913_s23, 8 }
  0x2a   : > { %s1346_s4 = scalar_select %p1084_p9, 1, 0 }
  0x2b   : > { %s519_s30 = sshll.u32 %s158_s8, 4  ;;  %s1347_s0 = sld [smem:[#allocation18_spill]] }
  0x2c   : > { %s162_s27 = scalar_lea.vmem [#allocation2], %s519_s30  ;;  %p1099_p10 = pnand %p591_p7, %p1031_p3 }
  0x2d   : > { %s170_s15 = sshll.u32 %s162_s27, 4  ;;  %p1105_p11 = pnand %p591_p7, %p1059_p12  ;;  %s1095_s15 = int_to_ptr.vmem [resolvable:$true] %s170_s15 }
  0x2e   : > { %p713_p5 = pneg %p1099_p10 }
  0x31   : > { %s1093_s10 = scalar_lea.hbm %s1347_s0, %s539_s28  ;;  %s159_s28 = scalar_lea.sflag [#allocation3], %s158_s8 }
  0x32   : > { %s711_s30 = scalar_lea.hbm %s1093_s10, 256  ;;  %s716_s11 = scalar_lea.hbm %s1347_s0, 512 }
  0x33   : > { %p712_p4 = scmp.ne.s32.totalorder %s1093_s10, %s711_s30  ;;  %p717_p12 = scmp.lt.u32.totalorder %s1093_s10, %s1347_s0 }
  0x34   : > { %p718_p7 = scmp.lt.u32.totalorder %s716_s11, %s711_s30  ;;  %p720_p1 = scmp.lt.u32.totalorder %s711_s30, %s1093_s10 }
  0x35   : > { %p714_p3 = pnand %p713_p5, %p712_p4 }
  0x36   : > { %p719_p0 = por %p718_p7, %p717_p12 }
  0x37   : > { %p715_p6 = pneg %p714_p3 }
  0x38   : > { %p721_p9 = por %p720_p1, %p719_p0 }
  0x3a   : > { %p722_p2 = pnand %p721_p9, %p715_p6 }
  0x3c   : > { %725 = shalt.err (!%p722_p2)
}
  0x3d   : > { %s726_s8 = scalar_lea.vmem %s1095_s15, 256  ;;  %s923_s5 = smov [#allocation2]  }
  0x3e   : > { %p727_p4 = scmp.ne.s32.totalorder %s1095_s15, %s726_s8  ;;  %s731_s26 = sshll.u32 %s923_s5, 4  ;;  %s732_s26 = int_to_ptr.vmem [resolvable:$false] %s731_s26 }
  0x3f   : > { %s733_s23 = scalar_lea.vmem %s732_s26, 512  ;;  %p734_p8 = scmp.lt.s32.totalorder %s1095_s15, %s732_s26 }
  0x40   : > { %p729_p3 = pnand %p727_p4, %p713_p5  ;;  %p735_p12 = scmp.lt.s32.totalorder %s733_s23, %s726_s8 }
  0x42   : > { %p730_p13 = pneg %p729_p3  ;;  %p736_p7 = por %p735_p12, %p734_p8 }
  0x44   : > { %p737_p0 = pnand %p736_p7, %p730_p13 }
  0x46   : > { %740 = shalt.err (!%p737_p0)
}
  0x47   : > { %583 = dma.hbm_to_vmem [thread:$0]  (!%p1099_p10), %s1093_s10, 256, %s1095_s15, %s159_s28  }
  0x48   : > { %p1350_p2 = scmp.lt.s32.totalorder %s921_s25, 5  ;;  %p1351_p9 = scmp.ge.s32.totalorder %s921_s25, 1 }
  0x49   : > { %s177_s11 = sand.u32 1, %s889_s17   ;;  %s541_s27 = sshll.u32 %s917_s24, 12 }
  0x4a   : > { %p1140_p1 = pnand %p1351_p9, %p1350_p2  ;;  %s522_s8 = sshll.u32 %s177_s11, 8 }
  0x4b   : > { %s1149_s26 = scalar_lea.hbm %s1322_s1, %s541_s27  ;;  %s181_s23 = scalar_lea.vmem [#allocation5], %s522_s8 }
  0x4c   : > { %s189_s10 = sshll.u32 %s181_s23, 4  ;;  %s1153_s15 = scalar_lea.sflag [#allocation6], %s177_s11  ;;  %s1151_s10 = int_to_ptr.vmem [resolvable:$true] %s189_s10 }
  0x4d   : > { %s741_s28 = scalar_lea.hbm %s1149_s26, 4096  ;;  %p743_p13 = pneg %p1105_p11 }
  0x4e   : > { %p742_p8 = scmp.ne.s32.totalorder %s1149_s26, %s741_s28  ;;  %s746_s29 = scalar_lea.hbm %s1322_s1, 8192 }
  0x4f   : > { %p747_p6 = scmp.lt.u32.totalorder %s1149_s26, %s1322_s1  ;;  %p748_p4 = scmp.lt.u32.totalorder %s746_s29, %s741_s28 }
  0x50   : > { %p744_p10 = pnand %p743_p13, %p742_p8  ;;  %p750_p12 = scmp.lt.u32.totalorder %s741_s28, %s1149_s26 }
  0x51   : > { %p749_p3 = por %p748_p4, %p747_p6 }
  0x52   : > { %p745_p5 = pneg %p744_p10 }
  0x53   : > { %p751_p7 = por %p750_p12, %p749_p3 }
  0x55   : > { %p752_p0 = pnand %p751_p7, %p745_p5 }
  0x57   : > { %755 = shalt.err (!%p752_p0)
}
  0x58   : > { %s756_s11 = scalar_lea.vmem %s1151_s10, 4096  ;;  %s924_s8 = smov [#allocation5]  }
  0x59   : > { %p757_p2 = scmp.ne.s32.totalorder %s1151_s10, %s756_s11  ;;  %s761_s23 = sshll.u32 %s924_s8, 4  ;;  %s762_s23 = int_to_ptr.vmem [resolvable:$false] %s761_s23 }
  0x5a   : > { %s763_s0 = scalar_lea.vmem %s762_s23, 8192  ;;  %p764_p10 = scmp.lt.s32.totalorder %s1151_s10, %s762_s23 }
  0x5b   : > { %p759_p9 = pnand %p757_p2, %p743_p13  ;;  %p765_p6 = scmp.lt.s32.totalorder %s763_s0, %s756_s11 }
  0x5d   : > { %p760_p8 = pneg %p759_p9  ;;  %p766_p4 = por %p765_p6, %p764_p10 }
  0x5f   : > { %p767_p3 = pnand %p766_p4, %p760_p8 }
  0x61   : > { %770 = shalt.err (!%p767_p3)
}
  0x62   : > { %s925_s24 = smov 256   ;;  %s926_s28 = smov 16  }
  0x63   : > { %586 = dma.hbm_to_vmem [thread:$0]  (!%p1105_p11), %s1149_s26, 4096, %s1151_s10, %s1153_s15, %s925_s24, %s925_s24, %s926_s28  }
  0x64   : > { %207 = sbr.rel (%p1140_p1) target bundleno = 435 (0x1b3), region = 32  ;;  %s209_s27 = sand.u32 (!%p1140_p1), 1, %s897_s19  }
  0x65   : > { %s527_s5 = sshll.u32 (!%p1140_p1), %s209_s27, 4  ;;  %s210_s29 = scalar_lea.sflag (!%p1140_p1), [#allocation3], %s209_s27 }
  0x66   : > { %s1184_s11 = scalar_lea.vmem (!%p1140_p1), [#allocation2], %s527_s5  ;;  %p1353_p13 = scmp.ne.s32.totalorder (!%p1140_p1), %s1339_s7, 0 }
  0x6b   : > { %856 = dma.done.wait (%p1353_p13), %s210_s29, 256  }
  0x6c   : > { %858 = vsyncadd (%p1353_p13), %s210_s29, 4294967040  ;;  %s218_s8 = sand.u32 1, %s885_s16   ;;  %p1354_p11 = scmp.ne.s32.totalorder %s1342_s18, 0 }
  0x6d   : > { %s528_s6 = sshll.u32 %s218_s8, 8  ;;  %s219_s26 = scalar_lea.sflag [#allocation6], %s218_s8 }
  0x6e   : > { %s1191_s10 = scalar_lea.vmem [#allocation5], %s528_s6 }
  0x6f   : > { %860 = dma.done.wait (%p1354_p11), %s219_s26, 4096  }
  0x70   : > { %862 = vsyncadd (%p1354_p11), %s219_s26, 4294963200  ;;  %v260_v0 = vld [vmem:[%s1191_s10 + $0x8] sm:$0xff]  ;;  %v262_v1 = vld [vmem:[%s1191_s10 + $0x18] sm:$0xff]  ;;  %p254_p1 = scmp.lt.s32.totalorder %s909_s22, 1  ;;  %s532_s23 = sshll.u32 %s909_s22, 7 }
  0x71   : > { %v259_v2 = vld [vmem:[%s1191_s10] sm:$0xff]  ;;  %v542_v3 = vpack.c.bf16 %v262_v1, %v260_v0  ;;  %v261_v4 = vld [vmem:[%s1191_s10 + $0x10] sm:$0xff]  ;;  %v264_v5 = vld [vmem:[%s1191_s10 + $0x28] sm:$0xff]  ;;  %s250_s0 = sand.u32 1, %s873_s13   ;;  %s375_s24 = sshra.s32 %s532_s23, 7 }
  0x72   : > { %v266_v6 = vld [vmem:[%s1191_s10 + $0x38] sm:$0xff]  ;;  %v544_v7 = vpack.c.bf16 %v261_v4, %v259_v2  ;;  %v263_v9 = vld [vmem:[%s1191_s10 + $0x20] sm:$0xff]  ;;  %v265_v10 = vld [vmem:[%s1191_s10 + $0x30] sm:$0xff]  ;;  %s255_s7 = scalar_select %p254_p1, %s909_s22, 1 }
  0x73   : > { %v546_v8 = vpack.c.bf16 %v266_v6, %v264_v5  ;;  %543 = vmatprep.subr.bf16.mxu0 %v542_v3  ;;  %v268_v11 = vld [vmem:[%s1191_s10 + $0x48] sm:$0xff]  ;;  %v270_v12 = vld [vmem:[%s1191_s10 + $0x58] sm:$0xff]  ;;  %v548_v13 = vpack.c.bf16 %v265_v10, %v263_v9  ;;  %v267_v16 = vld [vmem:[%s1191_s10 + $0x40] sm:$0xff]  ;;  %s529_s28 = sshll.u32 %s250_s0, 3  ;;  %s533_s27 = sshll.u32 %s375_s24, 3 }
  0x74   : > { %545 = vmatpush1.bf16.xpose.msra.mxu0 %v544_v7  ;;  %v550_v14 = vpack.c.bf16 %v270_v12, %v268_v11  ;;  %v258_v15 = vld [vmem:[%s1184_s11 + $0x8] sm:$0xff]  ;;  %v269_v17 = vld [vmem:[%s1191_s10 + $0x50] sm:$0xff]  ;;  %v271_v22 = vld [vmem:[%s1191_s10 + $0x60] sm:$0xff]  ;;  %s256_s15 = scalar_lea.vmem %s1323_s2, %s255_s7  ;;  %s535_s5 = sshll.u32 %s905_s21, 1 }
  0x75   : > { %547 = vmatprep.subr.bf16.mxu0 %v546_v8  ;;  %362 = vmatprep.mubr.f32.mxu0 %v258_v15  ;;  %v272_v18 = vld [vmem:[%s1191_s10 + $0x68] sm:$0xff]  ;;  %v274_v19 = vld [vmem:[%s1191_s10 + $0x78] sm:$0xff]  ;;  %v552_v20 = vpack.c.bf16 %v269_v17, %v267_v16  ;;  %v273_v23 = vld [vmem:[%s1191_s10 + $0x70] sm:$0xff]  ;;  %s378_s29 = scalar_lea.vmem %s1184_s11, %s533_s27 [#allocation2]  ;;  %s394_s8 = sadd.s32 %s909_s22, %s535_s5 }
  0x76   : > { %v554_v21 = vpack.c.bf16 %v274_v19, %v272_v18  ;;  %v276_v24 = vld [vmem:[%s1191_s10 + $0x88] sm:$0xff]  ;;  %v278_v25 = vld [vmem:[%s1191_s10 + $0x98] sm:$0xff]  ;;  %v556_v26 = vpack.c.bf16 %v273_v23, %v271_v22  ;;  %v275_v28 = vld [vmem:[%s1191_s10 + $0x80] sm:$0xff]  ;;  %s536_s6 = sshll.u32 %s394_s8, 7  ;;  %s252_s26 = scalar_lea.vmem [#allocation7], %s529_s28 }
  0x77   : > { %v558_v27 = vpack.c.bf16 %v278_v25, %v276_v24  ;;  %v277_v29 = vld [vmem:[%s1191_s10 + $0x90] sm:$0xff]  ;;  %v280_v30 = vld [vmem:[%s1191_s10 + $0xa8] sm:$0xff]  ;;  %v282_v31 = vld [vmem:[%s1191_s10 + $0xb8] sm:$0xff]  ;;  %s1244_s30 = scalar_lea.hbm %s1324_s3, %s536_s6  ;;  %s383_s21 = scalar_lea.sflag [#allocation4], %s250_s0 }
  0x78   : > { %v560_v32 = vpack.c.bf16 %v277_v29, %v275_v28  ;;  %v562_v33 = vpack.c.bf16 %v282_v31, %v280_v30  ;;  %v279_v34 = vld [vmem:[%s1191_s10 + $0xa0] sm:$0xff]  ;;  %v281_v35 = vld [vmem:[%s1191_s10 + $0xb0] sm:$0xff]  ;;  %v284_v36 = vld [vmem:[%s1191_s10 + $0xc8] sm:$0xff]  ;;  %p1355_p12 = scmp.ne.s32.totalorder %s1344_s9, 0  ;;  %s927_s22 = smov [#allocation7]  }
  0x79   : > { %v286_v37 = vld [vmem:[%s1191_s10 + $0xd8] sm:$0xff]  ;;  %v564_v38 = vpack.c.bf16 %v281_v35, %v279_v34  ;;  %v283_v40 = vld [vmem:[%s1191_s10 + $0xc0] sm:$0xff]  ;;  %v285_v41 = vld [vmem:[%s1191_s10 + $0xd0] sm:$0xff] }
  0x7a   : > { %v566_v39 = vpack.c.bf16 %v286_v37, %v284_v36  ;;  %v288_v42 = vld [vmem:[%s1191_s10 + $0xe8] sm:$0xff]  ;;  %v290_v43 = vld [vmem:[%s1191_s10 + $0xf8] sm:$0xff]  ;;  %v568_v44 = vpack.c.bf16 %v285_v41, %v283_v40  ;;  %v287_v46 = vld [vmem:[%s1191_s10 + $0xe0] sm:$0xff] }
  0x7b   : > { %v570_v45 = vpack.c.bf16 %v290_v43, %v288_v42  ;;  %v289_v47 = vld [vmem:[%s1191_s10 + $0xf0] sm:$0xff]  ;;  %v530_v50 = vld [vmem:[%s256_s15] ss:$0 sm:$0xff]  ;;  %s398_s10 = sshll.u32 %s252_s26, 4  ;;  %s775_s15 = sshll.u32 %s927_s22, 4  ;;  %s1246_s10 = int_to_ptr.vmem [resolvable:$true] %s398_s10  ;;  %s776_s15 = int_to_ptr.vmem [resolvable:$false] %s775_s15 }
  0x7c   : > { %549 = vmatpush1.bf16.xpose.msra.mxu0 %v548_v13  ;;  %v572_v48 = vpack.c.bf16 %v289_v47, %v287_v46  ;;  %v257_v49 = vld [vmem:[%s1184_s11] sm:$0xff]  ;;  %s771_s11 = scalar_lea.vmem %s1246_s10, 128  ;;  %s777_s23 = scalar_lea.vmem %s776_s15, 256 }
  0x7d   : > { %551 = vmatprep.subr.bf16.mxu0 %v550_v14  ;;  %v379_v57 = vld [vmem:[%s378_s29] sm:$0xff]  ;;  %p772_p5 = scmp.ne.s32.totalorder %s1246_s10, %s771_s11  ;;  %p778_p2 = scmp.lt.s32.totalorder %s1246_s10, %s776_s15 }
  0x7e   : > { %p779_p9 = scmp.lt.s32.totalorder %s777_s23, %s771_s11 }
  0x7f   : > { %p773_p7 = pnand %p772_p5, %p1355_p12 }
  0x80   : > { %p780_p8 = por %p779_p9, %p778_p2 }
  0x81   : > { %p774_p0 = pneg %p773_p7 }
  0x83   : > { %p781_p10 = pnand %p780_p8, %p774_p0 }
  0x84   : > { %553 = vmatpush1.bf16.xpose.msra.mxu0 %v552_v20 }
  0x85   : > { %555 = vmatprep.subr.bf16.mxu0 %v554_v21 }
  0x8c   : > { %557 = vmatpush1.bf16.xpose.msra.mxu0 %v556_v26 }
  0x8d   : > { %559 = vmatprep.subr.bf16.mxu0 %v558_v27 }
  0x94   : > { %561 = vmatpush1.bf16.xpose.msra.mxu0 %v560_v32 }
  0x95   : > { %563 = vmatprep.subr.bf16.mxu0 %v562_v33 }
  0x9c   : > { %565 = vmatpush1.bf16.xpose.msra.mxu0 %v564_v38 }
  0x9d   : > { %567 = vmatprep.subr.bf16.mxu0 %v566_v39 }
  0xa4   : > { %569 = vmatpush1.bf16.xpose.msra.mxu0 %v568_v44 }
  0xa5   : > { %571 = vmatprep.subr.bf16.mxu0 %v570_v45 }
  0xac   : > { %573 = vmatpush1.bf16.xpose.msra.mxu0 %v572_v48 }
  0xb3   : > { %363 = vmatmul.mubr.f32.vlgmr.msra.gmra.mrb[0].mxu0 %v257_v49 }
 0x186   : > { %v364_v51 = vpop.f32.mrb[0].mxu0 }
 0x187   : > { %v365_v52 = vadd.f32 %v530_v50, %v364_v51  ;;  %v366_v53 = vpop.f32.mrb[1].mxu0 }
 0x189   : > { %v531_v54 = vmul.f32 -1.442695, %v365_v52 }
 0x18b   : > { %707 = vpow2.f32 %v531_v54 }
 0x195   : > { %v708_v55 = vpop.eup %707 }
 0x196   : > { %v371_v56 = vadd.f32 1.0, %v708_v55 }
 0x198   : > { %709 = vrcp.f32 %v371_v56 }
 0x1a2   : > { %v710_v58 = vpop.eup %709 }
 0x1a3   : > { %v380_v59 = vmul.f32 %v710_v58, %v379_v57 }
 0x1a5   : > { %381 = vst [vmem:[%s252_s26] sm:$0xff] %v380_v59 }
 0x1a6   : > { %784 = shalt.err (!%p781_p10)
}
 0x1a7   : > { %s785_s0 = scalar_lea.hbm %s1244_s30, 128  ;;  %s789_s27 = scalar_lea.hbm %s1324_s3, 512 }
 0x1a8   : > { %p786_p6 = scmp.ne.s32.totalorder %s1244_s30, %s785_s0  ;;  %p790_p13 = scmp.lt.u32.totalorder %s1244_s30, %s1324_s3 }
 0x1a9   : > { %p791_p11 = scmp.lt.u32.totalorder %s789_s27, %s785_s0  ;;  %p793_p5 = scmp.lt.u32.totalorder %s785_s0, %s1244_s30 }
 0x1aa   : > { %p787_p4 = pnand %p786_p6, %p1355_p12 }
 0x1ab   : > { %p792_p1 = por %p791_p11, %p790_p13 }
 0x1ac   : > { %p788_p3 = pneg %p787_p4 }
 0x1ad   : > { %p794_p7 = por %p793_p5, %p792_p1 }
 0x1af   : > { %p795_p0 = pnand %p794_p7, %p788_p3 }
 0x1b1   : > { %798 = shalt.err (!%p795_p0)
}
 0x1b2   : > { %578 = dma.vmem_to_hbm [thread:$0]  (%p1355_p12), %s1246_s10, 128, %s1244_s30, %s383_s21  }
 0x1b3 PF: > { %p592_p2 = scmp.ge.s32.totalorder %s921_s25, 2  ;;  %s410_s8 = sand.u32 1, %s869_s12  }
 0x1b4   : > { %p1356_p9 = scmp.ne.s32.totalorder %s1346_s4, 0  ;;  %s411_s6 = scalar_lea.sflag [#allocation4], %s410_s8 }
 0x1b6   : > { %p588_p8 = pnand %p592_p2, %p1356_p9 }
 0x1b8   : > { %864 = dma.done.wait (!%p588_p8), %s411_s6, 128  }
 0x1b9   : > { %866 = vsyncadd (!%p588_p8), %s411_s6, 4294967168  ;;  %s22_s25 = sadd.s32 1, %s921_s25   ;;  %s1358_s9 = sld [smem:[#allocation17_spill]] }
 0x1ba   : > { %p1274_p10 = scmp.ge.s32.totalorder %s22_s25, 6   ;;  %s1359_s10 = sld [smem:[#allocation16_spill]] }
 0x1bb   : > { %s1360_s7 = sld [smem:[#allocation15_spill]]  ;;  %s1361_s21 = sld [smem:[#allocation11_spill]] }
 0x1bc   : > { %s1362_s22 = sld [smem:[#allocation12_spill]]  ;;  %s1363_s23 = sld [smem:[#allocation13_spill]] }
 0x1bd   : > { %s1364_s24 = sld [smem:[#allocation14_spill]]  ;;  %s1365_s12 = smov %s873_s13 }
 0x1be   : > { %s1366_s13 = smov %s877_s14  ;;  %s1368_s15 = smov %s885_s16 }
 0x1bf   : > { %s1367_s14 = smov %s1358_s9  ;;  %s1369_s16 = smov %s889_s17 }
 0x1c0   : > { %s1370_s17 = smov %s1359_s10  ;;  %s1371_s18 = smov %s897_s19 }
 0x1c1   : > { %s1372_s19 = smov %s901_s20  ;;  %s1373_s20 = smov %s1360_s7 }
 0x1c2   :  { %21 = sbr.rel (!%p1274_p10) target bundleno = 14 (0xe), region = 94 }
 0x1c9   :  { %416 = vsyncpa [#allocation3], 1 }
 0x1ca   :  { %418 = vsyncpa [#allocation3 + $0x1], 1 }
 0x1cb   :  { %419 = vsyncpa [#allocation6], 1 }
 0x1cc   :  { %421 = vsyncpa [#allocation6 + $0x1], 1 }
 0x1cd   :  { %422 = vsyncpa [#allocation4], 1 }
 0x1ce   :  { %424 = vsyncpa [#allocation4 + $0x1], 1 }

</bundles_post_ra>
